<compile_context>
chip_gen: v6e
topology: v6e:2x2x1
jax: 0.10.0
libtpu: 0.0.40
codegen_flags: <defaults>
</compile_context>

<pallas_src>
import numpy as np
import jax
import jax.numpy as jnp
from jax.experimental import pallas as pl
from jax.experimental.pallas import tpu as pltpu

BN_EPS = 1e-5


def _pairs_classifier_kernel(xv_ref, xf1_ref, xf2_ref, w_ref, out_ref):
    """Single fused forward pass for both face branches; everything in VMEM.

    Packed weight layout (rows):
      [0          : dim       ]        -> W1t (dim, L)   (output cols even/odd permuted)
      [dim        : dim+L/2   ][:L/4]  -> fc2 weight with BN folded (L/2, L/4), cols permuted
      [dim+L/2               ]         -> b1 (L,)
      [dim+L/2+1             ][:L/4]   -> b2' (BN-folded fc2 bias)
      [dim+L/2+2             ][:L/8]   -> fc3 weight row (bias cancels in the subtract)
    """
    B = xv_ref.shape[0]
    Dv = xv_ref.shape[1]
    Df = xf1_ref.shape[1]
    dim = Dv + Df
    L = w_ref.shape[1]
    L2, L4, L8 = L // 2, L // 4, L // 8

    # Static slices of the single packed weight array (zero-cost views -> loads).
    w1t = w_ref[0:dim, :]                                 # (dim, L)
    w2 = w_ref[dim:dim + L2, 0:L4]                        # (L/2, L/4)
    b1 = w_ref[dim + L2:dim + L2 + 1, :]                  # (1, L)
    b2 = w_ref[dim + L2 + 1:dim + L2 + 2, 0:L4]           # (1, L/4)
    w3 = w_ref[dim + L2 + 2:dim + L2 + 3, 0:L8]           # (1, L/8)

    # Build both branch inputs as one (2B, dim) block: rows [0:B]=branch1, [B:2B]=branch2.
    xv = xv_ref[...]
    x = jnp.concatenate(
        [jnp.concatenate([xv, xf1_ref[...]], axis=1),
         jnp.concatenate([xv, xf2_ref[...]], axis=1)],
        axis=0)                                            # (2B, dim)

    # fc1 (single K=dim matmul) + ReLU + MaxPool1d(2) (pool == half split after perm).
    h = jnp.dot(x, w1t, preferred_element_type=jnp.float32) + b1   # (2B, L)
    h = jnp.maximum(h, 0.0)
    h = jnp.maximum(h[:, :L2], h[:, L2:])                           # (2B, L/2)

    # BatchNorm1d (eval, folded) + Dropout(identity) + fc2 + ReLU + pool.
    h2 = jnp.dot(h, w2, preferred_element_type=jnp.float32) + b2    # (2B, L/4)
    h2 = jnp.maximum(h2, 0.0)
    h2 = jnp.maximum(h2[:, :L8], h2[:, L8:])                        # (2B, L/8)

    # Subtract branches first, then fc3 as a VPU multiply + lane reduction.
    d = h2[:B, :] - h2[B:, :]                                       # (B, L/8)
    out_ref[...] = jnp.sum(d * w3, axis=-1, keepdims=True)          # (B, 1)


def _even_odd_perm(n):
    return np.concatenate([np.arange(0, n, 2), np.arange(1, n, 2)])


def make_params(key, input_sz_voice, input_sz_face, input_layer_size):
    """Deterministic synthetic parameters (PyTorch Linear shapes: W is (out, in))."""
    dim = input_sz_voice + input_sz_face
    L = input_layer_size
    ks = jax.random.split(key, 10)

    W1 = jax.random.normal(ks[0], (L, dim), jnp.float32) * 0.05
    b1 = jax.random.normal(ks[1], (L,), jnp.float32) * 0.05
    W2 = jax.random.normal(ks[2], (L // 4, L // 2), jnp.float32) * 0.05
    b2 = jax.random.normal(ks[3], (L // 4,), jnp.float32) * 0.05
    W3 = jax.random.normal(ks[4], (1, L // 8), jnp.float32) * 0.05
    b3 = jax.random.normal(ks[5], (1,), jnp.float32) * 0.05
    gamma = 1.0 + 0.1 * jax.random.normal(ks[6], (L // 2,), jnp.float32)
    beta = 0.1 * jax.random.normal(ks[7], (L // 2,), jnp.float32)
    r_mean = 0.1 * jax.random.normal(ks[8], (L // 2,), jnp.float32)
    r_var = jnp.abs(1.0 + 0.1 * jax.random.normal(ks[9], (L // 2,), jnp.float32))
    return dict(W1=W1, b1=b1, W2=W2, b2=b2, W3=W3, b3=b3,
                gamma=gamma, beta=beta, r_mean=r_mean, r_var=r_var)


def prepare_params(params, input_sz_voice, input_sz_face, input_layer_size):
    """One-time weight preprocessing: transpose, pool-permute, BN fold, and packing
    of ALL weights/biases into a single (rows, L) f32 array (one DMA at call time)."""
    L = input_layer_size
    dim = input_sz_voice + input_sz_face
    L2, L4, L8 = L // 2, L // 4, L // 8
    perm1 = _even_odd_perm(L)
    perm2 = _even_odd_perm(L4)

    # fc1: transpose to (in, out) and permute OUTPUT columns so pool == half split.
    W1t = jnp.asarray(params["W1"], jnp.float32).T[:, perm1]          # (dim, L)
    b1 = jnp.asarray(params["b1"], jnp.float32)[perm1]                # (L,)

    # Fold eval-mode BatchNorm1d into fc2: BN(h) @ W2t + b2
    #   = h @ (s[:,None]*W2t) + ((beta - mean*s) @ W2t + b2),  s = gamma*rsqrt(var+eps)
    s = params["gamma"] * jax.lax.rsqrt(params["r_var"] + BN_EPS)     # (L/2,)
    shift = params["beta"] - params["r_mean"] * s                     # (L/2,)
    W2t = jnp.asarray(params["W2"], jnp.float32).T[:, perm2]          # (L/2, L/4)
    w2 = s[:, None] * W2t                                             # (L/2, L/4)
    b2 = shift @ W2t + jnp.asarray(params["b2"], jnp.float32)[perm2]  # (L/4,)

    # fc3 weight as a row; fc3 bias cancels in out = y1 - y2 and is dropped.
    w3 = jnp.asarray(params["W3"], jnp.float32).reshape(-1)           # (L/8,)

    rows = dim + L2 + 3
    rows_padded = int(-(-rows // 8) * 8)                              # sublane-friendly pad
    packed = jnp.zeros((rows_padded, L), jnp.float32)
    packed = packed.at[0:dim, :].set(W1t)
    packed = packed.at[dim:dim + L2, 0:L4].set(w2)
    packed = packed.at[dim + L2, :].set(b1)
    packed = packed.at[dim + L2 + 1, 0:L4].set(b2)
    packed = packed.at[dim + L2 + 2, 0:L8].set(w3)

    return dict(packed=jax.device_put(packed))


def voice_face_pairs_classifier(x_v, x_f1, x_f2, prepped):
    """Per-call path: a single gridless pallas_call with 4 input DMAs."""
    B = x_v.shape[0]
    dim = x_v.shape[1] + x_f1.shape[1]
    packed = prepped["packed"]
    L = packed.shape[1]

    flops = 2 * (2 * B) * dim * L + 2 * (2 * B) * (L // 2) * (L // 4) + 2 * B * (L // 8)
    bytes_accessed = 4 * (x_v.size + x_f1.size + x_f2.size + packed.size + B)

    vmem = pl.BlockSpec(memory_space=pltpu.MemorySpace.VMEM)
    return pl.pallas_call(
        _pairs_classifier_kernel,
        out_shape=jax.ShapeDtypeStruct((B, 1), jnp.float32),
        in_specs=[vmem] * 4,
        out_specs=vmem,
        cost_estimate=pl.CostEstimate(flops=flops, transcendentals=0,
                                      bytes_accessed=bytes_accessed),
    )(x_v, x_f1, x_f2, packed)


def reference_forward(x_v, x_f1, x_f2, params):
    """Pure-JAX eval-mode reference mirroring the PyTorch forward exactly."""
    def pool2(x):
        b, l = x.shape
        return jnp.max(x.reshape(b, l // 2, 2), axis=2)

    def branch(x_f):
        x = jnp.concatenate([x_v, x_f], axis=1)
        x = pool2(jax.nn.relu(x @ params["W1"].T + params["b1"]))
        x = (x - params["r_mean"]) / jnp.sqrt(params["r_var"] + BN_EPS) \
            * params["gamma"] + params["beta"]
        x = pool2(jax.nn.relu(x @ params["W2"].T + params["b2"]))
        return x @ params["W3"].T + params["b3"]

    return branch(x_f1) - branch(x_f2)


if __name__ == "__main__":
    B = 8
    input_sz_voice, input_sz_face = 96, 32
    cfg = {"input_layer_size": 64, "dropout": 0.3}
    L = cfg["input_layer_size"]

    key = jax.random.PRNGKey(0)
    k_param, k_v, k_f1, k_f2 = jax.random.split(key, 4)
    params = make_params(k_param, input_sz_voice, input_sz_face, L)
    prepped = prepare_params(params, input_sz_voice, input_sz_face, L)  # one-time

    x_v = jax.random.normal(k_v, (B, input_sz_voice), jnp.float32)
    x_f1 = jax.random.normal(k_f1, (B, input_sz_face), jnp.float32)
    x_f2 = jax.random.normal(k_f2, (B, input_sz_face), jnp.float32)

    out = voice_face_pairs_classifier(x_v, x_f1, x_f2, prepped)
    out = jax.block_until_ready(out)

    ref = jax.block_until_ready(reference_forward(x_v, x_f1, x_f2, params))
    assert out.shape == (B, 1)
    np.testing.assert_allclose(np.asarray(out), np.asarray(ref), rtol=1e-4, atol=1e-4)
    print("KERNEL_OK")
</pallas_src>

<mosaic_0001>
module attributes {stable_mosaic.version = 11 : i64} {
  func.func @_pairs_classifier_kernel(%arg0: memref<8x96xf32, #tpu.memory_space<vmem>>, %arg1: memref<8x32xf32, #tpu.memory_space<vmem>>, %arg2: memref<8x32xf32, #tpu.memory_space<vmem>>, %arg3: memref<168x64xf32, #tpu.memory_space<vmem>>, %arg4: memref<8x1xf32, #tpu.memory_space<vmem>>) attributes {dimension_semantics = [], scalar_prefetch = 0 : i64, scratch_operands = 0 : i64, tpu.core_type = #tpu.core_type<tc>} {
    %c0 = arith.constant 0 : index
    %c0_0 = arith.constant 0 : index
    %0 = vector.load %arg3[%c0, %c0_0] : memref<168x64xf32, #tpu.memory_space<vmem>>, vector<128x64xf32>
    %c128 = arith.constant 128 : index
    %c0_1 = arith.constant 0 : index
    %1 = vector.load %arg3[%c128, %c0_1] : memref<168x64xf32, #tpu.memory_space<vmem>>, vector<32x16xf32>
    %c160 = arith.constant 160 : index
    %c0_2 = arith.constant 0 : index
    %2 = vector.load %arg3[%c160, %c0_2] : memref<168x64xf32, #tpu.memory_space<vmem>>, vector<1x64xf32>
    %c161 = arith.constant 161 : index
    %c0_3 = arith.constant 0 : index
    %3 = vector.load %arg3[%c161, %c0_3] : memref<168x64xf32, #tpu.memory_space<vmem>>, vector<1x16xf32>
    %c162 = arith.constant 162 : index
    %c0_4 = arith.constant 0 : index
    %4 = vector.load %arg3[%c162, %c0_4] : memref<168x64xf32, #tpu.memory_space<vmem>>, vector<1x8xf32>
    %c0_5 = arith.constant 0 : index
    %c0_6 = arith.constant 0 : index
    %5 = vector.load %arg0[%c0_5, %c0_6] : memref<8x96xf32, #tpu.memory_space<vmem>>, vector<8x96xf32>
    %c0_7 = arith.constant 0 : index
    %c0_8 = arith.constant 0 : index
    %6 = vector.load %arg1[%c0_7, %c0_8] : memref<8x32xf32, #tpu.memory_space<vmem>>, vector<8x32xf32>
    %7 = tpu.concatenate %5, %6 in 1 : vector<8x96xf32>, vector<8x32xf32> -> vector<8x128xf32>
    %c0_9 = arith.constant 0 : index
    %c0_10 = arith.constant 0 : index
    %8 = vector.load %arg2[%c0_9, %c0_10] : memref<8x32xf32, #tpu.memory_space<vmem>>, vector<8x32xf32>
    %9 = tpu.concatenate %5, %8 in 1 : vector<8x96xf32>, vector<8x32xf32> -> vector<8x128xf32>
    %10 = tpu.concatenate %7, %9 in 0 : vector<8x128xf32>, vector<8x128xf32> -> vector<16x128xf32>
    %cst = arith.constant dense<0.000000e+00> : vector<16x64xf32>
    %11 = tpu.matmul %10, %0, %cst {dimension_numbers = #tpu.dot_dimension_numbers<[1], [0], [0], [1], [0, 0, 1, 1], [], []>} : vector<16x128xf32>, vector<128x64xf32>, vector<16x64xf32> -> vector<16x64xf32>
    %12 = vector.broadcast %2 : vector<1x64xf32> to vector<16x64xf32>
    %13 = arith.addf %11, %12 : vector<16x64xf32>
    %cst_11 = arith.constant 0.000000e+00 : f32
    %14 = vector.broadcast %cst_11 : f32 to vector<16x64xf32>
    %15 = arith.maximumf %13, %14 : vector<16x64xf32>
    %16 = vector.extract_strided_slice %15 {offsets = [0, 0], sizes = [16, 32], strides = [1, 1]} : vector<16x64xf32> to vector<16x32xf32>
    %17 = vector.extract_strided_slice %15 {offsets = [0, 32], sizes = [16, 32], strides = [1, 1]} : vector<16x64xf32> to vector<16x32xf32>
    %18 = arith.maximumf %16, %17 : vector<16x32xf32>
    %cst_12 = arith.constant dense<0.000000e+00> : vector<16x16xf32>
    %19 = tpu.matmul %18, %1, %cst_12 {dimension_numbers = #tpu.dot_dimension_numbers<[1], [0], [0], [1], [0, 0, 1, 1], [], []>} : vector<16x32xf32>, vector<32x16xf32>, vector<16x16xf32> -> vector<16x16xf32>
    %20 = vector.broadcast %3 : vector<1x16xf32> to vector<16x16xf32>
    %21 = arith.addf %19, %20 : vector<16x16xf32>
    %cst_13 = arith.constant 0.000000e+00 : f32
    %22 = vector.broadcast %cst_13 : f32 to vector<16x16xf32>
    %23 = arith.maximumf %21, %22 : vector<16x16xf32>
    %24 = vector.extract_strided_slice %23 {offsets = [0, 0], sizes = [16, 8], strides = [1, 1]} : vector<16x16xf32> to vector<16x8xf32>
    %25 = vector.extract_strided_slice %23 {offsets = [0, 8], sizes = [16, 8], strides = [1, 1]} : vector<16x16xf32> to vector<16x8xf32>
    %26 = arith.maximumf %24, %25 : vector<16x8xf32>
    %27 = vector.extract_strided_slice %26 {offsets = [0, 0], sizes = [8, 8], strides = [1, 1]} : vector<16x8xf32> to vector<8x8xf32>
    %28 = vector.extract_strided_slice %26 {offsets = [8, 0], sizes = [8, 8], strides = [1, 1]} : vector<16x8xf32> to vector<8x8xf32>
    %29 = arith.subf %27, %28 : vector<8x8xf32>
    %30 = vector.broadcast %4 : vector<1x8xf32> to vector<8x8xf32>
    %31 = arith.mulf %29, %30 : vector<8x8xf32>
    %cst_14 = arith.constant dense<0.000000e+00> : vector<8xf32>
    %32 = vector.multi_reduction <add>, %31, %cst_14 [1] : vector<8x8xf32> to vector<8xf32>
    %33 = vector.shape_cast %32 : vector<8xf32> to vector<8x1xf32>
    %c0_15 = arith.constant 0 : index
    %c0_16 = arith.constant 0 : index
    %34 = vector.load %arg4[%c0_15, %c0_16] : memref<8x1xf32, #tpu.memory_space<vmem>>, vector<8x1xf32>
    tpu.vector_store %arg4[%c0_15, %c0_16], %33 {strides = array<i32>} : memref<8x1xf32, #tpu.memory_space<vmem>>, vector<8x1xf32>,
    return
  }
}

</mosaic_0001>

<bundles_post_ra>
// kernel: tpu_custom_call.1
= control target key start
LH: loop header
LB: loop body
LE: loop exit
PB: predicated region body
PF: predicated region fallthrough
CT: control target
= control target key end

     0   :  { %vm46_vm0 = vcmask 785408   ;;  %vm149_vm1 = vcmask 261120   ;;  %s342_s10 = smov 120   ;;  %vm249_vm2 = vcmask 64512   ;;  %vm253_vm3 = vcmask 7168   ;;  %s452_s1 = inlined_call_operand.vmem [shape: f32[8,32], index: 1, kind: input, shape index: {}]   ;;  %s453_s2 = inlined_call_operand.vmem [shape: f32[8,32], index: 2, kind: input, shape index: {}]   ;;  %s454_s3 = inlined_call_operand.vmem [shape: f32[168,64], index: 3, kind: input, shape index: {}]   ;;  %s455_s0 = inlined_call_operand.vmem [shape: f32[8,96], index: 0, kind: input, shape index: {}]   ;;  %s456_s4 = inlined_call_operand.vmem [shape: f32[8,1], index: 4, kind: output, shape index: {}]  }
   0x1   :  { %v41_v0 = vld [vmem:[%s452_s1] sm:$0xff]  ;;  %v32_v2 = vld [vmem:[%s454_s3 + $0x78] sm:$0xff]  ;;  %v31_v4 = vld [vmem:[%s454_s3 + $0x70] sm:$0xff]  ;;  %s341_s1 = smov 96  }
   0x2   :  { %v48_v1 = vld [vmem:[%s453_s2] sm:$0xff]  ;;  %288 = vmatprep.subr.mxu0 %v32_v2  ;;  %v30_v5 = vld [vmem:[%s454_s3 + $0x68] sm:$0xff]  ;;  %v28_v7 = vld [vmem:[%s454_s3 + $0x58] sm:$0xff] }
   0x3   :  { %v336_v3 = vpack.i.bf16 %v48_v1, %v41_v0  ;;  %289 = vmatpush3.msra.mxu0 %v32_v2  ;;  %v29_v6 = vld [vmem:[%s454_s3 + $0x60] sm:$0xff]  ;;  %v27_v8 = vld [vmem:[%s454_s3 + $0x50] sm:$0xff]  ;;  %v26_v9 = vld [vmem:[%s454_s3 + $0x48] sm:$0xff] }
   0x4   :  { %290 = vmatprep.subr.mxu0 %v31_v4  ;;  %v25_v10 = vld [vmem:[%s454_s3 + $0x40] sm:$0xff]  ;;  %v24_v11 = vld [vmem:[%s454_s3 + $0x38] sm:$0xff]  ;;  %v23_v12 = vld [vmem:[%s454_s3 + $0x30] sm:$0xff] }
   0x5   :  { %337 = vrot.lane.b32.xlu0 %v336_v3, %s341_s1  ;;  %291 = vmatpush3.msra.mxu0 %v31_v4  ;;  %v22_v13 = vld [vmem:[%s454_s3 + $0x28] sm:$0xff]  ;;  %v21_v14 = vld [vmem:[%s454_s3 + $0x20] sm:$0xff]  ;;  %v20_v15 = vld [vmem:[%s454_s3 + $0x18] sm:$0xff] }
   0x6   :  { %292 = vmatprep.subr.mxu0 %v30_v5  ;;  %v19_v16 = vld [vmem:[%s454_s3 + $0x10] sm:$0xff]  ;;  %v18_v17 = vld [vmem:[%s454_s3 + $0x8] sm:$0xff]  ;;  %v17_v18 = vld [vmem:[%s454_s3] sm:$0xff] }
   0x7   :  { %293 = vmatpush3.msra.mxu0 %v30_v5  ;;  %v40_v20 = vld [vmem:[%s455_s0] sm:$0xff]  ;;  %v36_v25 = vld [vmem:[%s454_s3 + $0x98] sm:$0xff]  ;;  %v35_v26 = vld [vmem:[%s454_s3 + $0x90] sm:$0xff] }
   0x8   :  { %294 = vmatprep.subr.mxu0 %v29_v6  ;;  %323 = vmatprep.subr.mxu1 %v36_v25  ;;  %v34_v27 = vld [vmem:[%s454_s3 + $0x88] sm:$0xff]  ;;  %v33_v28 = vld [vmem:[%s454_s3 + $0x80] sm:$0xff] }
   0x9   :  { %295 = vmatpush3.msra.mxu0 %v29_v6  ;;  %324 = vmatpush3.msra.mxu1 %v36_v25  ;;  %v259_v29 = vld [vmem:[%s454_s3 + $0xa0] ss:$0 sm:$0xff]  ;;  %v260_v40 = vld [vmem:[%s454_s3 + $0xa1] ss:$0 sm:$0xff]  ;;  %v263_v51 = vld [vmem:[%s454_s3 + $0xa2] ss:$0 sm:$0xff] }
   0xa   :  { %296 = vmatprep.subr.mxu0 %v28_v7  ;;  %325 = vmatprep.subr.mxu1 %v35_v26 }
   0xb   :  { %297 = vmatpush3.msra.mxu0 %v28_v7  ;;  %326 = vmatpush3.msra.mxu1 %v35_v26 }
   0xc   :  { %298 = vmatprep.subr.mxu0 %v27_v8  ;;  %327 = vmatprep.subr.mxu1 %v34_v27 }
   0xd   :  { %299 = vmatpush3.msra.mxu0 %v27_v8  ;;  %328 = vmatpush3.msra.mxu1 %v34_v27 }
   0xe   :  { %300 = vmatprep.subr.mxu0 %v26_v9  ;;  %329 = vmatprep.subr.mxu1 %v33_v28 }
   0xf   :  { %301 = vmatpush3.msra.mxu0 %v26_v9  ;;  %330 = vmatpush3.msra.mxu1 %v33_v28 }
  0x10   :  { %302 = vmatprep.subr.mxu0 %v25_v10 }
  0x11   :  { %303 = vmatpush3.msra.mxu0 %v25_v10 }
  0x12   :  { %304 = vmatprep.subr.mxu0 %v24_v11 }
  0x13   :  { %305 = vmatpush3.msra.mxu0 %v24_v11 }
  0x14   :  { %306 = vmatprep.subr.mxu0 %v23_v12 }
  0x15   :  { %307 = vmatpush3.msra.mxu0 %v23_v12 }
  0x16   :  { %308 = vmatprep.subr.mxu0 %v22_v13 }
  0x17   :  { %309 = vmatpush3.msra.mxu0 %v22_v13 }
  0x18   :  { %310 = vmatprep.subr.mxu0 %v21_v14 }
  0x19   :  { %311 = vmatpush3.msra.mxu0 %v21_v14 }
  0x1a   :  { %312 = vmatprep.subr.mxu0 %v20_v15 }
  0x1b   :  { %313 = vmatpush3.msra.mxu0 %v20_v15 }
  0x1c   :  { %314 = vmatprep.subr.mxu0 %v19_v16 }
  0x1d   :  { %315 = vmatpush3.msra.mxu0 %v19_v16 }
  0x1e   :  { %316 = vmatprep.subr.mxu0 %v18_v17 }
  0x1f   :  { %317 = vmatpush3.msra.mxu0 %v18_v17 }
  0x20   :  { %318 = vmatprep.subr.mxu0 %v17_v18 }
  0x21   :  { %319 = vmatpush3.msra.mxu0 %v17_v18 }
  0x77   :  { %v338_v19 = vpop.permute.xlu0 %337 }
  0x78   :  { %v340_v21 = vunpack.i.h.bf16 %v338_v19  ;;  %v339_v22 = vunpack.i.l.bf16 %v338_v19 }
  0x7a   :  { %v47_v23 = vsel %vm46_vm0, %v40_v20, %v339_v22  ;;  %v53_v24 = vsel %vm46_vm0, %v40_v20, %v340_v21 }
  0x7b   :  { %320 = vmatprep.mubr.f32.mxu0 %v47_v23 }
  0x7c   :  { %321 = vmatmul.mubr.f32.vlgmr.msra.gmra.mxu0 %v53_v24 }
 0x13c   :  { %v322_v30 = vpop.f32.mrf.mxu0 }
 0x13d   :  { %v130_v31 = vadd.f32 %v322_v30, %v259_v29 }
 0x13e   :  { %v124_v32 = vpop.f32.mrf.mxu0 }
 0x13f   :  { %v134_v33 = vmax.f32 %v130_v31, 0.0  ;;  %v125_v34 = vadd.f32 %v259_v29, %v124_v32 }
 0x141   :  { %v133_v35 = vmax.f32 %v125_v34, 0.0  ;;  %139 = vrot.lane.b32.xlu1 %v134_v33, %s341_s1 }
 0x143   :  { %137 = vrot.lane.b32.xlu0 %v133_v35, %s341_s1 }
 0x1b3   :  { %v140_v36 = vpop.permute.xlu1 %139 }
 0x1b4   :  { %v144_v39 = vmax.f32 %v134_v33, %v140_v36 }
 0x1b5   :  { %v138_v37 = vpop.permute.xlu0 %137 }
 0x1b6   :  { %v143_v38 = vmax.f32 %v133_v35, %v138_v37 }
 0x1b8   :  { %331 = vmatprep.mubr.msk.f32.mxu1 %vm149_vm1, %v143_v38 }
 0x1b9   :  { %332 = vmatmul.mubr.msk.f32.vlgmr.msra.gmra.mxu1 %vm149_vm1, %v144_v39 }
 0x279   :  { %v333_v41 = vpop.f32.mrf.mxu1 }
 0x27a   :  { %v228_v42 = vadd.f32 %v333_v41, %v260_v40 }
 0x27b   :  { %v222_v43 = vpop.f32.mrf.mxu1 }
 0x27c   :  { %v232_v44 = vmax.f32 %v228_v42, 0.0  ;;  %v223_v45 = vadd.f32 %v260_v40, %v222_v43 }
 0x27e   :  { %v231_v46 = vmax.f32 %v223_v45, 0.0  ;;  %237 = vrot.lane.b32.xlu0 %v232_v44, %s342_s10 }
 0x280   :  { %235 = vrot.lane.b32.xlu1 %v231_v46, %s342_s10 }
 0x2f0   :  { %v238_v47 = vpop.permute.xlu0 %237 }
 0x2f1   :  { %v242_v49 = vmax.f32 %v232_v44, %v238_v47 }
 0x2f2   :  { %v236_v48 = vpop.permute.xlu1 %235 }
 0x2f3   :  { %v241_v50 = vmax.f32 %v231_v46, %v236_v48 }
 0x2f5   :  { %v243_v52 = vsub.f32 %v241_v50, %v242_v49 }
 0x2f7   :  { %v248_v53 = vmul.f32 %v263_v51, %v243_v52 }
 0x2f9   :  { %v250_v54 = vsel %vm249_vm2, %v248_v53, 0.0 }
 0x2fa   :  { %251 = vadd.xlane.f32.xlu1 %v250_v54 }
 0x383   :  { %v252_v55 = vpop.xlane.xlu1 %251 }
 0x384   :  { %254 = vst.msk [vmem:[%s456_s4] sm:$0xff] %vm253_vm3, %v252_v55 }

</bundles_post_ra>
